<compile_context>
chip_gen: v7x
topology: tpu7x:2x2x1
jax: 0.10.0
libtpu: 0.0.40
codegen_flags: <defaults>
</compile_context>

<pallas_src>
import functools

import jax
import jax.numpy as jnp
from jax.experimental import pallas as pl
from jax.experimental.pallas import tpu as pltpu


def _round_up(v, m):
    return ((v + m - 1) // m) * m


def _tdnn_bn_kernel(*refs, ctx, out_features):
    """One (tn, o_out) output block for one batch element.

    ctx > 1 refs : x_cur (tn, D), overlap (ovl, D), W (ctx*D, o_out),
                   bias/gamma/beta (1, o_out) f32, out (tn, o_out)
    ctx == 1 refs: x_cur (tn, D_k), W (D_k, o_out), bias/gamma/beta, out
    """
    if ctx > 1:
        x_ref, ov_ref, w_ref, b_ref, g_ref, be_ref, o_ref = refs
    else:
        x_ref, w_ref, b_ref, g_ref, be_ref, o_ref = refs
    tn = o_ref.shape[0]

    if ctx > 1:
        # In-kernel context splice.  xw holds the tn + (ctx-1) input rows this tile needs;
        # the ctx sublane-shifted slices + lane concat run once (XLU work) and feed a
        # single K = ctx*D MXU dot below (instead of ctx under-filled K = D dots).
        xw = jnp.concatenate([x_ref[...], ov_ref[0:ctx - 1, :]], axis=0)
        spliced = jnp.concatenate([xw[i:i + tn, :] for i in range(ctx)], axis=-1)
    else:
        spliced = x_ref[...]

    # Affine transform: one fused matmul, f32 accumulation.
    y = jnp.dot(spliced, w_ref[...], preferred_element_type=jnp.float32) + b_ref[...]

    # LayerNorm over the real O features (two-pass: mean, then centered variance),
    # PyTorch semantics (biased variance, eps = 1e-5).  When the output dim is padded,
    # the padded columns of W/b are zero so y there is exactly 0; their (0 - mean)^2
    # contribution to the centered sum is removed exactly below.
    o_blk = y.shape[-1]
    inv_o = 1.0 / float(out_features)
    mean = jnp.sum(y, axis=-1, keepdims=True) * inv_o
    yc = y - mean
    s2 = jnp.sum(yc * yc, axis=-1, keepdims=True)
    n_pad = o_blk - out_features
    if n_pad:
        s2 = s2 - float(n_pad) * (mean * mean)
    var = jnp.maximum(s2 * inv_o, 0.0)
    y_n = yc * jax.lax.rsqrt(var + 1e-5)
    y_n = y_n * g_ref[...] + be_ref[...]

    # ReLU
    o_ref[...] = jnp.maximum(y_n, 0.0).astype(o_ref.dtype)


def _pick_time_tile_and_vmem(n_sub, d_k, ctx, o_out, in_bytes, out_bytes, requested):
    """Generation-aware time tile + scoped VMEM limit."""
    try:
        cap = int(pltpu.get_tpu_info().vmem_capacity_bytes)
    except Exception:
        cap = 128 << 20
    # v7x: 64 MiB physical per TensorCore -> keep the scoped limit <= ~44 MiB.
    vmem_limit = (44 << 20) if cap <= (64 << 20) else (48 << 20)
    budget = vmem_limit - (6 << 20)  # headroom for compiler scratch / semaphores

    def est(tn):
        fixed = ctx * d_k * o_out * in_bytes + 8 * o_out * 4     # 1-buf weight + vectors
        per_tile = (2 * tn * d_k * in_bytes                      # 2-buf input tile
                    + 2 * 8 * d_k * in_bytes                     # 2-buf overlap slab
                    + 2 * tn * o_out * out_bytes                 # 2-buf output tile
                    + (ctx + 1) * tn * d_k * in_bytes            # splice temporaries
                    + 2 * tn * o_out * 4)                        # f32 y / centered y
        return fixed + per_tile

    tn = min(_round_up(int(requested), 8), max(8, _round_up(n_sub, 8)))
    while tn > 64 and est(tn) > budget:
        tn = max(64, _round_up(tn // 2, 8))
    return tn, vmem_limit


def tdnn_batchnorm_forward(x, weight, bias, gamma, beta,
                           context_len=1, subsampling_factor=1,
                           *, compute_dtype=jnp.bfloat16,
                           out_dtype=jnp.bfloat16,
                           time_tile=512):
    """x: (mb, T, D).  weight: (feat_dim*context_len, output_dim) (input-major, i.e.
    y = spliced_x @ weight + bias).  bias/gamma/beta: (output_dim,).
    Returns (mb, N_sub, output_dim) in out_dtype."""
    mb, T, D = x.shape
    l = int(context_len)
    s = int(subsampling_factor)
    N = T - l + 1
    O = int(weight.shape[1])

    if s > 1:
        # TODO(synk): in-kernel context splice is only implemented for subsampling_factor
        # == 1; for s > 1 splice + subsample on the host and run the same kernel with an
        # effective context of 1 (still time-tiled / pipelined).
        xc = jnp.concatenate([x[:, i:i + N, :] for i in range(l)], axis=-1)
        x_in = xc[:, ::s, :]
        ctx, d_k = 1, D * l
        n_sub = x_in.shape[1]
    else:
        x_in = x
        ctx, d_k = l, D
        n_sub = N

    # Cast once on the host: halves input DMA bytes and all in-kernel splice temporaries.
    x_in = x_in.astype(compute_dtype)

    # Output-dim layout: pad for lane-dense (unmasked) stores only when it is cheap
    # (<= 12.5% extra writeback).  Small O (e.g. 32) is stored unpadded (full-dim block,
    # masked stores) to avoid a 128/O writeback blowup plus a post-kernel slice copy.
    o_full = _round_up(O, 128)
    o_out = o_full if (o_full == O or (o_full - O) * 8 <= O) else O

    w2 = weight.reshape(ctx * d_k, O)
    if o_out != O:
        w2 = jnp.pad(w2, ((0, 0), (0, o_out - O)))
    w2 = w2.astype(compute_dtype)

    def _vec(p):
        p = p.reshape(1, O).astype(jnp.float32)
        if o_out != O:
            p = jnp.pad(p, ((0, 0), (0, o_out - O)))
        return p

    b2, g2, be2 = _vec(bias), _vec(gamma), _vec(beta)

    in_bytes = jnp.dtype(compute_dtype).itemsize
    out_bytes = jnp.dtype(out_dtype).itemsize
    tn, vmem_limit = _pick_time_tile_and_vmem(n_sub, d_k, ctx, o_out,
                                              in_bytes, out_bytes, time_tile)
    nt = pl.cdiv(n_sub, tn)
    # v7x has 2 TensorCores per chip: make sure the parallel grid has >= 2 steps.
    if mb * nt < 2 and n_sub > 8:
        tn = max(8, _round_up((n_sub + 1) // 2, 8))
        nt = pl.cdiv(n_sub, tn)

    ovl = _round_up(max(ctx - 1, 1), 8) if ctx > 1 else 0
    if ctx > 1 and tn < ovl:
        tn = ovl
        nt = pl.cdiv(n_sub, tn)

    # Tiny safeguard for very short sequences: keep the input at least one tile long.
    if x_in.shape[1] < tn:
        x_in = jnp.pad(x_in, ((0, 0), (0, tn - x_in.shape[1]), (0, 0)))
    t_in = x_in.shape[1]

    args = [x_in]
    in_specs = [pl.BlockSpec((None, tn, d_k), lambda b, j: (b, j, 0))]

    if ctx > 1:
        # Overlap slab: the first `ovl` rows of each *next* tile, built host-side with a
        # pad + reshape + slice (only mb*nt*ovl*D elements).  Replaces the previous full
        # duplicated "next tile" input.  Rows past T are zero and only ever feed output
        # rows >= n_sub, which the masked output store drops.
        t_need = nt * tn + ovl
        xp = x_in if t_in >= t_need else jnp.pad(x_in, ((0, 0), (0, t_need - t_in), (0, 0)))
        tail = xp[:, tn:tn + nt * tn, :]
        if tail.shape[1] < nt * tn:
            tail = jnp.pad(tail, ((0, 0), (0, nt * tn - tail.shape[1]), (0, 0)))
        overlap = tail.reshape(mb, nt, tn, d_k)[:, :, :ovl, :]
        args.append(overlap)
        in_specs.append(pl.BlockSpec((None, None, ovl, d_k), lambda b, j: (b, j, 0, 0)))

    args += [w2, b2, g2, be2]

    kernel = functools.partial(_tdnn_bn_kernel, ctx=ctx, out_features=O)

    def _call(single_buffer_consts):
        # Grid-invariant operands: constant index_map; single-buffer them to reclaim VMEM.
        const_kw = dict(pipeline_mode=pl.Buffered(1)) if single_buffer_consts else {}
        const_specs = [
            pl.BlockSpec((ctx * d_k, o_out), lambda b, j: (0, 0), **const_kw),  # weight
            pl.BlockSpec((1, o_out), lambda b, j: (0, 0), **const_kw),          # bias
            pl.BlockSpec((1, o_out), lambda b, j: (0, 0), **const_kw),          # LN gamma
            pl.BlockSpec((1, o_out), lambda b, j: (0, 0), **const_kw),          # LN beta
        ]
        grid_spec = pltpu.PrefetchScalarGridSpec(
            num_scalar_prefetch=0,
            grid=(mb, nt),
            in_specs=in_specs + const_specs,
            out_specs=pl.BlockSpec((None, tn, o_out), lambda b, j: (b, j, 0)),
        )
        return pl.pallas_call(
            kernel,
            out_shape=jax.ShapeDtypeStruct((mb, n_sub, o_out), out_dtype),
            grid_spec=grid_spec,
            compiler_params=pltpu.CompilerParams(
                dimension_semantics=("parallel", "parallel"),
                vmem_limit_bytes=vmem_limit),
        )(*args)

    try:
        out = _call(True)      # preferred: single-buffered resident weight/vectors
    except Exception:
        out = _call(False)     # fallback if pipeline_mode=pl.Buffered(1) is unsupported
    return out if o_out == O else out[:, :, :O]


def _reference(x, weight, bias, gamma, beta, context_len, subsampling_factor):
    mb, T, D = x.shape
    l = context_len
    N = T - l + 1
    xc = jnp.concatenate([x[:, i:i + N, :] for i in range(l)], axis=-1)
    if subsampling_factor > 1:
        xc = xc[:, ::subsampling_factor, :]
    y = xc @ weight + bias
    mean = jnp.mean(y, axis=-1, keepdims=True)
    var = jnp.mean((y - mean) ** 2, axis=-1, keepdims=True)
    y = (y - mean) / jnp.sqrt(var + 1e-5) * gamma + beta
    return jnp.maximum(y, 0.0)


if __name__ == "__main__":
    # Small deterministic example consistent with the module's forward: (mb, T, D)
    mb, T, D = 2, 16, 32
    output_dim = 32
    context_len = 3

    key = jax.random.PRNGKey(0)
    kx, kw, kb, ke = jax.random.split(key, 4)
    x = jax.random.normal(kx, (mb, T, D), dtype=jnp.float32)

    # NaturalAffineTransform params: weight (feat_dim*context_len, output_dim), bias (output_dim,)
    weight = 0.1 * jax.random.normal(kw, (D * context_len, output_dim), dtype=jnp.float32)
    bias = 0.1 * jax.random.normal(kb, (output_dim,), dtype=jnp.float32)
    # LayerNorm default init: gamma = 1, beta = 0
    gamma = jnp.ones((output_dim,), dtype=jnp.float32)
    beta = jnp.zeros((output_dim,), dtype=jnp.float32)

    ref = _reference(x, weight, bias, gamma, beta, context_len, 1)

    # 1) f32 MXU path — tight check against the pure-JAX reference.
    out_f32 = jax.block_until_ready(
        tdnn_batchnorm_forward(x, weight, bias, gamma, beta,
                               context_len=context_len, subsampling_factor=1,
                               compute_dtype=jnp.float32, out_dtype=jnp.float32))
    assert out_f32.shape == (mb, T - context_len + 1, output_dim), out_f32.shape
    assert jnp.allclose(out_f32, ref, atol=1e-4, rtol=1e-4), "f32 path mismatch"

    # 2) default bf16 path (bf16 matmul + f32 accum/LayerNorm, bf16 output) — looser tolerance.
    out_bf16 = jax.block_until_ready(
        tdnn_batchnorm_forward(x, weight, bias, gamma, beta,
                               context_len=context_len, subsampling_factor=1))
    assert out_bf16.shape == ref.shape, out_bf16.shape
    assert jnp.allclose(out_bf16.astype(jnp.float32), ref, atol=1e-1, rtol=1e-1), "bf16 path mismatch"

    # 3) subsampling_factor > 1 (host-splice fallback path), f32 — tight check.
    out_ss = jax.block_until_ready(
        tdnn_batchnorm_forward(x, weight, bias, gamma, beta,
                               context_len=context_len, subsampling_factor=2,
                               compute_dtype=jnp.float32, out_dtype=jnp.float32))
    ref_ss = _reference(x, weight, bias, gamma, beta, context_len, 2)
    assert out_ss.shape == ref_ss.shape, (out_ss.shape, ref_ss.shape)
    assert jnp.allclose(out_ss, ref_ss, atol=1e-4, rtol=1e-4), "subsampling path mismatch"

    # 4) Edge case from review: n_sub % tn != 0 and T % tn < ctx (partial last output tile
    #    whose overlap slab partly comes from the zero-padded region — only for dropped rows).
    T2 = 17
    x2 = jax.random.normal(ke, (mb, T2, D), dtype=jnp.float32)
    out_edge = jax.block_until_ready(
        tdnn_batchnorm_forward(x2, weight, bias, gamma, beta,
                               context_len=context_len, subsampling_factor=1,
                               compute_dtype=jnp.float32, out_dtype=jnp.float32,
                               time_tile=8))
    ref_edge = _reference(x2, weight, bias, gamma, beta, context_len, 1)
    assert out_edge.shape == ref_edge.shape, (out_edge.shape, ref_edge.shape)
    assert jnp.allclose(out_edge, ref_edge, atol=1e-4, rtol=1e-4), "edge-case path mismatch"

    print("KERNEL_OK")
</pallas_src>

<mosaic_0001>
module attributes {stable_mosaic.version = 11 : i64} {
  func.func @_tdnn_bn_kernel(%arg0: i32, %arg1: i32, %arg2: memref<1x16x32xf32, #tpu.memory_space<vmem>>, %arg3: memref<1x1x8x32xf32, #tpu.memory_space<vmem>>, %arg4: memref<96x32xf32, #tpu.memory_space<vmem>>, %arg5: memref<1x32xf32, #tpu.memory_space<vmem>>, %arg6: memref<1x32xf32, #tpu.memory_space<vmem>>, %arg7: memref<1x32xf32, #tpu.memory_space<vmem>>, %arg8: memref<1x16x32xf32, #tpu.memory_space<vmem>>) attributes {dimension_semantics = [#tpu.dimension_semantics<parallel>, #tpu.dimension_semantics<parallel>], iteration_bounds = array<i64: 2, 1>, scalar_prefetch = 0 : i64, scratch_operands = 0 : i64, tpu.core_type = #tpu.core_type<tc>, window_params = [{transform_indices = @transform_0, window_bounds = array<i64: 1, 16, 32>}, {transform_indices = @transform_1, window_bounds = array<i64: 1, 1, 8, 32>}, {pipeline_mode = #tpu.pipeline_mode<synchronous>, transform_indices = @transform_2, window_bounds = array<i64: 96, 32>}, {pipeline_mode = #tpu.pipeline_mode<synchronous>, transform_indices = @transform_3, window_bounds = array<i64: 1, 32>}, {pipeline_mode = #tpu.pipeline_mode<synchronous>, transform_indices = @transform_4, window_bounds = array<i64: 1, 32>}, {pipeline_mode = #tpu.pipeline_mode<synchronous>, transform_indices = @transform_5, window_bounds = array<i64: 1, 32>}, {transform_indices = @transform_6, window_bounds = array<i64: 1, 16, 32>}]} {
    %c0 = arith.constant 0 : index
    %c0_0 = arith.constant 0 : index
    %c0_1 = arith.constant 0 : index
    %0 = vector.load %arg2[%c0, %c0_0, %c0_1] : memref<1x16x32xf32, #tpu.memory_space<vmem>>, vector<1x16x32xf32>
    %1 = vector.shape_cast %0 : vector<1x16x32xf32> to vector<16x32xf32>
    %c0_2 = arith.constant 0 : index
    %c0_3 = arith.constant 0 : index
    %c0_4 = arith.constant 0 : index
    %c0_5 = arith.constant 0 : index
    %2 = vector.load %arg3[%c0_2, %c0_3, %c0_4, %c0_5] : memref<1x1x8x32xf32, #tpu.memory_space<vmem>>, vector<1x1x2x32xf32>
    %3 = vector.shape_cast %2 : vector<1x1x2x32xf32> to vector<2x32xf32>
    %4 = tpu.concatenate %1, %3 in 0 : vector<16x32xf32>, vector<2x32xf32> -> vector<18x32xf32>
    %5 = vector.extract_strided_slice %4 {offsets = [0, 0], sizes = [16, 32], strides = [1, 1]} : vector<18x32xf32> to vector<16x32xf32>
    %6 = vector.extract_strided_slice %4 {offsets = [1, 0], sizes = [16, 32], strides = [1, 1]} : vector<18x32xf32> to vector<16x32xf32>
    %7 = vector.extract_strided_slice %4 {offsets = [2, 0], sizes = [16, 32], strides = [1, 1]} : vector<18x32xf32> to vector<16x32xf32>
    %8 = tpu.concatenate %5, %6, %7 in 1 : vector<16x32xf32>, vector<16x32xf32>, vector<16x32xf32> -> vector<16x96xf32>
    %c0_6 = arith.constant 0 : index
    %c0_7 = arith.constant 0 : index
    %9 = vector.load %arg4[%c0_6, %c0_7] : memref<96x32xf32, #tpu.memory_space<vmem>>, vector<96x32xf32>
    %cst = arith.constant dense<0.000000e+00> : vector<16x32xf32>
    %10 = tpu.matmul %8, %9, %cst {dimension_numbers = #tpu.dot_dimension_numbers<[1], [0], [0], [1], [0, 0, 1, 1], [], []>} : vector<16x96xf32>, vector<96x32xf32>, vector<16x32xf32> -> vector<16x32xf32>
    %c0_8 = arith.constant 0 : index
    %c0_9 = arith.constant 0 : index
    %11 = vector.load %arg5[%c0_8, %c0_9] : memref<1x32xf32, #tpu.memory_space<vmem>>, vector<1x32xf32>
    %12 = vector.broadcast %11 : vector<1x32xf32> to vector<16x32xf32>
    %13 = arith.addf %10, %12 : vector<16x32xf32>
    %cst_10 = arith.constant dense<0.000000e+00> : vector<16xf32>
    %14 = vector.multi_reduction <add>, %13, %cst_10 [1] : vector<16x32xf32> to vector<16xf32>
    %15 = vector.shape_cast %14 : vector<16xf32> to vector<16x1xf32>
    %cst_11 = arith.constant 3.125000e-02 : f32
    %16 = vector.broadcast %cst_11 : f32 to vector<16x1xf32>
    %17 = arith.mulf %15, %16 : vector<16x1xf32>
    %18 = vector.broadcast %17 : vector<16x1xf32> to vector<16x32xf32>
    %19 = arith.subf %13, %18 : vector<16x32xf32>
    %20 = arith.mulf %19, %19 : vector<16x32xf32>
    %cst_12 = arith.constant dense<0.000000e+00> : vector<16xf32>
    %21 = vector.multi_reduction <add>, %20, %cst_12 [1] : vector<16x32xf32> to vector<16xf32>
    %22 = vector.shape_cast %21 : vector<16xf32> to vector<16x1xf32>
    %cst_13 = arith.constant 3.125000e-02 : f32
    %23 = vector.broadcast %cst_13 : f32 to vector<16x1xf32>
    %24 = arith.mulf %22, %23 : vector<16x1xf32>
    %cst_14 = arith.constant 0.000000e+00 : f32
    %25 = vector.broadcast %cst_14 : f32 to vector<16x1xf32>
    %26 = arith.maximumf %24, %25 : vector<16x1xf32>
    %cst_15 = arith.constant 9.99999974E-6 : f32
    %27 = vector.broadcast %cst_15 : f32 to vector<16x1xf32>
    %28 = arith.addf %26, %27 : vector<16x1xf32>
    %29 = math.rsqrt %28 : vector<16x1xf32>
    %30 = vector.broadcast %29 : vector<16x1xf32> to vector<16x32xf32>
    %31 = arith.mulf %19, %30 : vector<16x32xf32>
    %c0_16 = arith.constant 0 : index
    %c0_17 = arith.constant 0 : index
    %32 = vector.load %arg6[%c0_16, %c0_17] : memref<1x32xf32, #tpu.memory_space<vmem>>, vector<1x32xf32>
    %33 = vector.broadcast %32 : vector<1x32xf32> to vector<16x32xf32>
    %34 = arith.mulf %31, %33 : vector<16x32xf32>
    %c0_18 = arith.constant 0 : index
    %c0_19 = arith.constant 0 : index
    %35 = vector.load %arg7[%c0_18, %c0_19] : memref<1x32xf32, #tpu.memory_space<vmem>>, vector<1x32xf32>
    %36 = vector.broadcast %35 : vector<1x32xf32> to vector<16x32xf32>
    %37 = arith.addf %34, %36 : vector<16x32xf32>
    %cst_20 = arith.constant 0.000000e+00 : f32
    %38 = vector.broadcast %cst_20 : f32 to vector<16x32xf32>
    %39 = arith.maximumf %37, %38 : vector<16x32xf32>
    %c0_21 = arith.constant 0 : index
    %c0_22 = arith.constant 0 : index
    %c0_23 = arith.constant 0 : index
    %40 = vector.load %arg8[%c0_21, %c0_22, %c0_23] : memref<1x16x32xf32, #tpu.memory_space<vmem>>, vector<1x16x32xf32>
    %41 = vector.shape_cast %40 : vector<1x16x32xf32> to vector<16x32xf32>
    %42 = vector.shape_cast %39 : vector<16x32xf32> to vector<1x16x32xf32>
    tpu.vector_store %arg8[%c0_21, %c0_22, %c0_23], %42 {strides = array<i32>} : memref<1x16x32xf32, #tpu.memory_space<vmem>>, vector<1x16x32xf32>,
    return
  }
  func.func @transform_0(%arg0: i32, %arg1: i32) -> (i32, i32, i32) {
    %c0_i32 = arith.constant 0 : i32
    %c0_i32_0 = arith.constant 0 : i32
    return %arg0, %arg1, %c0_i32 : i32, i32, i32
  }
  func.func @transform_1(%arg0: i32, %arg1: i32) -> (i32, i32, i32, i32) {
    %c0_i32 = arith.constant 0 : i32
    %c0_i32_0 = arith.constant 0 : i32
    %c0_i32_1 = arith.constant 0 : i32
    return %arg0, %arg1, %c0_i32, %c0_i32_0 : i32, i32, i32, i32
  }
  func.func @transform_2(%arg0: i32, %arg1: i32) -> (i32, i32) {
    %c0_i32 = arith.constant 0 : i32
    %c0_i32_0 = arith.constant 0 : i32
    %c0_i32_1 = arith.constant 0 : i32
    return %c0_i32, %c0_i32_0 : i32, i32
  }
  func.func @transform_3(%arg0: i32, %arg1: i32) -> (i32, i32) {
    %c0_i32 = arith.constant 0 : i32
    %c0_i32_0 = arith.constant 0 : i32
    %c0_i32_1 = arith.constant 0 : i32
    return %c0_i32, %c0_i32_0 : i32, i32
  }
  func.func @transform_4(%arg0: i32, %arg1: i32) -> (i32, i32) {
    %c0_i32 = arith.constant 0 : i32
    %c0_i32_0 = arith.constant 0 : i32
    %c0_i32_1 = arith.constant 0 : i32
    return %c0_i32, %c0_i32_0 : i32, i32
  }
  func.func @transform_5(%arg0: i32, %arg1: i32) -> (i32, i32) {
    %c0_i32 = arith.constant 0 : i32
    %c0_i32_0 = arith.constant 0 : i32
    %c0_i32_1 = arith.constant 0 : i32
    return %c0_i32, %c0_i32_0 : i32, i32
  }
  func.func @transform_6(%arg0: i32, %arg1: i32) -> (i32, i32, i32) {
    %c0_i32 = arith.constant 0 : i32
    %c0_i32_0 = arith.constant 0 : i32
    return %arg0, %arg1, %c0_i32 : i32, i32, i32
  }
}

module attributes {stable_mosaic.version = 11 : i64} {
  func.func @_tdnn_bn_kernel(%arg0: i32, %arg1: i32, %arg2: memref<1x16x32xf32, #tpu.memory_space<vmem>>, %arg3: memref<1x1x8x32xf32, #tpu.memory_space<vmem>>, %arg4: memref<96x32xf32, #tpu.memory_space<vmem>>, %arg5: memref<1x32xf32, #tpu.memory_space<vmem>>, %arg6: memref<1x32xf32, #tpu.memory_space<vmem>>, %arg7: memref<1x32xf32, #tpu.memory_space<vmem>>, %arg8: memref<1x16x32xf32, #tpu.memory_space<vmem>>) attributes {dimension_semantics = [#tpu.dimension_semantics<parallel>, #tpu.dimension_semantics<parallel>], iteration_bounds = array<i64: 2, 1>, scalar_prefetch = 0 : i64, scratch_operands = 0 : i64, tpu.core_type = #tpu.core_type<tc>, window_params = [{transform_indices = @transform_0, window_bounds = array<i64: 1, 16, 32>}, {transform_indices = @transform_1, window_bounds = array<i64: 1, 1, 8, 32>}, {pipeline_mode = #tpu.pipeline_mode<synchronous>, transform_indices = @transform_2, window_bounds = array<i64: 96, 32>}, {pipeline_mode = #tpu.pipeline_mode<synchronous>, transform_indices = @transform_3, window_bounds = array<i64: 1, 32>}, {pipeline_mode = #tpu.pipeline_mode<synchronous>, transform_indices = @transform_4, window_bounds = array<i64: 1, 32>}, {pipeline_mode = #tpu.pipeline_mode<synchronous>, transform_indices = @transform_5, window_bounds = array<i64: 1, 32>}, {transform_indices = @transform_6, window_bounds = array<i64: 1, 16, 32>}]} {
    %c0 = arith.constant 0 : index
    %c0_0 = arith.constant 0 : index
    %c0_1 = arith.constant 0 : index
    %0 = vector.load %arg2[%c0, %c0_0, %c0_1] : memref<1x16x32xf32, #tpu.memory_space<vmem>>, vector<1x16x32xf32>
    %1 = vector.shape_cast %0 : vector<1x16x32xf32> to vector<16x32xf32>
    %c0_2 = arith.constant 0 : index
    %c0_3 = arith.constant 0 : index
    %c0_4 = arith.constant 0 : index
    %c0_5 = arith.constant 0 : index
    %2 = vector.load %arg3[%c0_2, %c0_3, %c0_4, %c0_5] : memref<1x1x8x32xf32, #tpu.memory_space<vmem>>, vector<1x1x2x32xf32>
    %3 = vector.shape_cast %2 : vector<1x1x2x32xf32> to vector<2x32xf32>
    %4 = tpu.concatenate %1, %3 in 0 : vector<16x32xf32>, vector<2x32xf32> -> vector<18x32xf32>
    %5 = vector.extract_strided_slice %4 {offsets = [0, 0], sizes = [16, 32], strides = [1, 1]} : vector<18x32xf32> to vector<16x32xf32>
    %6 = vector.extract_strided_slice %4 {offsets = [1, 0], sizes = [16, 32], strides = [1, 1]} : vector<18x32xf32> to vector<16x32xf32>
    %7 = vector.extract_strided_slice %4 {offsets = [2, 0], sizes = [16, 32], strides = [1, 1]} : vector<18x32xf32> to vector<16x32xf32>
    %8 = tpu.concatenate %5, %6, %7 in 1 : vector<16x32xf32>, vector<16x32xf32>, vector<16x32xf32> -> vector<16x96xf32>
    %c0_6 = arith.constant 0 : index
    %c0_7 = arith.constant 0 : index
    %9 = vector.load %arg4[%c0_6, %c0_7] : memref<96x32xf32, #tpu.memory_space<vmem>>, vector<96x32xf32>
    %cst = arith.constant dense<0.000000e+00> : vector<16x32xf32>
    %10 = tpu.matmul %8, %9, %cst {dimension_numbers = #tpu.dot_dimension_numbers<[1], [0], [0], [1], [0, 0, 1, 1], [], []>} : vector<16x96xf32>, vector<96x32xf32>, vector<16x32xf32> -> vector<16x32xf32>
    %c0_8 = arith.constant 0 : index
    %c0_9 = arith.constant 0 : index
    %11 = vector.load %arg5[%c0_8, %c0_9] : memref<1x32xf32, #tpu.memory_space<vmem>>, vector<1x32xf32>
    %12 = vector.broadcast %11 : vector<1x32xf32> to vector<16x32xf32>
    %13 = arith.addf %10, %12 : vector<16x32xf32>
    %cst_10 = arith.constant dense<0.000000e+00> : vector<16xf32>
    %14 = vector.multi_reduction <add>, %13, %cst_10 [1] : vector<16x32xf32> to vector<16xf32>
    %15 = vector.shape_cast %14 : vector<16xf32> to vector<16x1xf32>
    %cst_11 = arith.constant 3.125000e-02 : f32
    %16 = vector.broadcast %cst_11 : f32 to vector<16x1xf32>
    %17 = arith.mulf %15, %16 : vector<16x1xf32>
    %18 = vector.broadcast %17 : vector<16x1xf32> to vector<16x32xf32>
    %19 = arith.subf %13, %18 : vector<16x32xf32>
    %20 = arith.mulf %19, %19 : vector<16x32xf32>
    %cst_12 = arith.constant dense<0.000000e+00> : vector<16xf32>
    %21 = vector.multi_reduction <add>, %20, %cst_12 [1] : vector<16x32xf32> to vector<16xf32>
    %22 = vector.shape_cast %21 : vector<16xf32> to vector<16x1xf32>
    %cst_13 = arith.constant 3.125000e-02 : f32
    %23 = vector.broadcast %cst_13 : f32 to vector<16x1xf32>
    %24 = arith.mulf %22, %23 : vector<16x1xf32>
    %cst_14 = arith.constant 0.000000e+00 : f32
    %25 = vector.broadcast %cst_14 : f32 to vector<16x1xf32>
    %26 = arith.maximumf %24, %25 : vector<16x1xf32>
    %cst_15 = arith.constant 9.99999974E-6 : f32
    %27 = vector.broadcast %cst_15 : f32 to vector<16x1xf32>
    %28 = arith.addf %26, %27 : vector<16x1xf32>
    %29 = math.rsqrt %28 : vector<16x1xf32>
    %30 = vector.broadcast %29 : vector<16x1xf32> to vector<16x32xf32>
    %31 = arith.mulf %19, %30 : vector<16x32xf32>
    %c0_16 = arith.constant 0 : index
    %c0_17 = arith.constant 0 : index
    %32 = vector.load %arg6[%c0_16, %c0_17] : memref<1x32xf32, #tpu.memory_space<vmem>>, vector<1x32xf32>
    %33 = vector.broadcast %32 : vector<1x32xf32> to vector<16x32xf32>
    %34 = arith.mulf %31, %33 : vector<16x32xf32>
    %c0_18 = arith.constant 0 : index
    %c0_19 = arith.constant 0 : index
    %35 = vector.load %arg7[%c0_18, %c0_19] : memref<1x32xf32, #tpu.memory_space<vmem>>, vector<1x32xf32>
    %36 = vector.broadcast %35 : vector<1x32xf32> to vector<16x32xf32>
    %37 = arith.addf %34, %36 : vector<16x32xf32>
    %cst_20 = arith.constant 0.000000e+00 : f32
    %38 = vector.broadcast %cst_20 : f32 to vector<16x32xf32>
    %39 = arith.maximumf %37, %38 : vector<16x32xf32>
    %c0_21 = arith.constant 0 : index
    %c0_22 = arith.constant 0 : index
    %c0_23 = arith.constant 0 : index
    %40 = vector.load %arg8[%c0_21, %c0_22, %c0_23] : memref<1x16x32xf32, #tpu.memory_space<vmem>>, vector<1x16x32xf32>
    %41 = vector.shape_cast %40 : vector<1x16x32xf32> to vector<16x32xf32>
    %42 = vector.shape_cast %39 : vector<16x32xf32> to vector<1x16x32xf32>
    tpu.vector_store %arg8[%c0_21, %c0_22, %c0_23], %42 {strides = array<i32>} : memref<1x16x32xf32, #tpu.memory_space<vmem>>, vector<1x16x32xf32>,
    return
  }
  func.func @transform_0(%arg0: i32, %arg1: i32) -> (i32, i32, i32) {
    %c0_i32 = arith.constant 0 : i32
    %c0_i32_0 = arith.constant 0 : i32
    return %arg0, %arg1, %c0_i32 : i32, i32, i32
  }
  func.func @transform_1(%arg0: i32, %arg1: i32) -> (i32, i32, i32, i32) {
    %c0_i32 = arith.constant 0 : i32
    %c0_i32_0 = arith.constant 0 : i32
    %c0_i32_1 = arith.constant 0 : i32
    return %arg0, %arg1, %c0_i32, %c0_i32_0 : i32, i32, i32, i32
  }
  func.func @transform_2(%arg0: i32, %arg1: i32) -> (i32, i32) {
    %c0_i32 = arith.constant 0 : i32
    %c0_i32_0 = arith.constant 0 : i32
    %c0_i32_1 = arith.constant 0 : i32
    return %c0_i32, %c0_i32_0 : i32, i32
  }
  func.func @transform_3(%arg0: i32, %arg1: i32) -> (i32, i32) {
    %c0_i32 = arith.constant 0 : i32
    %c0_i32_0 = arith.constant 0 : i32
    %c0_i32_1 = arith.constant 0 : i32
    return %c0_i32, %c0_i32_0 : i32, i32
  }
  func.func @transform_4(%arg0: i32, %arg1: i32) -> (i32, i32) {
    %c0_i32 = arith.constant 0 : i32
    %c0_i32_0 = arith.constant 0 : i32
    %c0_i32_1 = arith.constant 0 : i32
    return %c0_i32, %c0_i32_0 : i32, i32
  }
  func.func @transform_5(%arg0: i32, %arg1: i32) -> (i32, i32) {
    %c0_i32 = arith.constant 0 : i32
    %c0_i32_0 = arith.constant 0 : i32
    %c0_i32_1 = arith.constant 0 : i32
    return %c0_i32, %c0_i32_0 : i32, i32
  }
  func.func @transform_6(%arg0: i32, %arg1: i32) -> (i32, i32, i32) {
    %c0_i32 = arith.constant 0 : i32
    %c0_i32_0 = arith.constant 0 : i32
    return %arg0, %arg1, %c0_i32 : i32, i32, i32
  }
}

</mosaic_0001>

<bundles_post_ra>
// kernel: tpu_custom_call.1
= control target key start
LH: loop header
LB: loop body
LE: loop exit
PB: predicated region body
PF: predicated region fallthrough
CT: control target
= control target key end

     0   :  { %s783_s21 = smov 0   ;;  %s785_s22 = smov 0   ;;  %s884_s0 = inlined_call_operand.vmem [shape: f32[2,16,32], index: 0, kind: input, shape index: {}]   ;;  %s885_s1 = inlined_call_operand.vmem [shape: f32[2,1,8,32], index: 1, kind: input, shape index: {}]   ;;  %s886_s2 = inlined_call_operand.vmem [shape: f32[96,32], index: 2, kind: input, shape index: {}]   ;;  %s887_s3 = inlined_call_operand.vmem [shape: f32[1,32], index: 3, kind: input, shape index: {}]   ;;  %s888_s4 = inlined_call_operand.vmem [shape: f32[1,32], index: 4, kind: input, shape index: {}]   ;;  %s889_s5 = inlined_call_operand.vmem [shape: f32[1,32], index: 5, kind: input, shape index: {}]   ;;  %s890_s6 = inlined_call_operand.vmem [shape: f32[2,14,32], index: 6, kind: output, shape index: {}]  }
   0x1   :  { %s787_s23 = smov 0  }
   0x2 LB: > { %s28_s24 = sadd.s32 1, %s740_s22  ;;  %p612_p0 = scmp.ge.s32.totalorder %s744_s23, 1  ;;  %s744_s23 = sphi %s787_s23, %s16_s23   ;;  %s740_s22 = sphi %s785_s22, %s892_s22   ;;  %s736_s21 = sphi %s783_s21, %s891_s21  }
   0x3   : > { %p30_p1 = scmp.ge.s32.totalorder %s28_s24, 2  ;;  %p247_p2 = scmp.lt.s32.totalorder %s744_s23, 3 }
   0x5   : > { %s894_s24 = smov (%p30_p1, %s28_s24), 0  ;;  %p248_p3 = pnand %p612_p0, %p247_p2 }
   0x6   : > { %p293_p4 = scmp.lt.s32.totalorder (!%p248_p3), %s736_s21, 1  ;;  %v355_v0 = vld [vmem:[%s886_s2] sm:$0xff] (!%p248_p3)  ;;  %v356_v1 = vld [vmem:[%s886_s2 + $0x8] sm:$0xff] (!%p248_p3)  ;;  %v357_v3 = vld [vmem:[%s886_s2 + $0x10] sm:$0xff] (!%p248_p3)  ;;  %vm325_vm0 = vcmask (!%p248_p3), 1046528   ;;  %vm337_vm1 = vcmask (!%p248_p3), 1045504  }
   0x7   : > { %251 = sbr.rel (%p248_p3) target bundleno = 679 (0x2a7), region = 44  ;;  %v668_v2 = vpack.c.bf16 (!%p248_p3), %v356_v1, %v355_v0  ;;  %v358_v4 = vld [vmem:[%s886_s2 + $0x18] sm:$0xff] (!%p248_p3)  ;;  %v359_v6 = vld [vmem:[%s886_s2 + $0x20] sm:$0xff] (!%p248_p3)  ;;  %v360_v7 = vld [vmem:[%s886_s2 + $0x28] sm:$0xff] (!%p248_p3)  ;;  %s746_s29 = smov (!%p248_p3), 32   ;;  %vm349_vm2 = vcmask (!%p248_p3), 261120  }
   0x8   : > { %v672_v5 = vpack.c.bf16 (!%p248_p3), %v358_v4, %v357_v3  ;;  %v676_v8 = vpack.c.bf16 (!%p248_p3), %v360_v7, %v359_v6  ;;  %v361_v9 = vld [vmem:[%s886_s2 + $0x30] sm:$0xff] (!%p248_p3)  ;;  %v362_v12 = vld [vmem:[%s886_s2 + $0x38] sm:$0xff] (!%p248_p3)  ;;  %s747_s30 = smov (!%p248_p3), 64   ;;  %v363_v23 = vld [vmem:[%s886_s2 + $0x40] sm:$0xff] (!%p248_p3)  ;;  %vm352_vm3 = vcmask (!%p248_p3), 523264   ;;  %vm374_vm4 = vcmask (!%p248_p3), 785408  }
   0x9   : > { %669 = vmatprep.subr.bf16.mxu0 (!%p248_p3), %v668_v2  ;;  %v680_v22 = vpack.c.bf16 (!%p248_p3), %v362_v12, %v361_v9  ;;  %v364_v24 = vld [vmem:[%s886_s2 + $0x48] sm:$0xff] (!%p248_p3)  ;;  %v365_v28 = vld [vmem:[%s886_s2 + $0x50] sm:$0xff] (!%p248_p3)  ;;  %v366_v29 = vld [vmem:[%s886_s2 + $0x58] sm:$0xff] (!%p248_p3) }
   0xa   : > { %671 = vmatpush3.bf16.msra.mxu0 (!%p248_p3), %v668_v2  ;;  %v684_v27 = vpack.c.bf16 (!%p248_p3), %v364_v24, %v363_v23  ;;  %v688_v30 = vpack.c.bf16 (!%p248_p3), %v366_v29, %v365_v28  ;;  %v618_v39 = vld [vmem:[%s887_s3] ss:$0 sm:$0xff] (!%p248_p3) }
   0xb   : > { %673 = vmatprep.subr.bf16.mxu0 (!%p248_p3), %v672_v5  ;;  %v621_v1 = vld [vmem:[%s888_s4] ss:$0 sm:$0xff] (!%p248_p3) }
   0xc   : > { %v622_v3 = vld [vmem:[%s889_s5] ss:$0 sm:$0xff] (!%p248_p3) }
   0xe   : > { %s896_s21 = smov (!%p293_p4, %s736_s21), 1  ;;  %675 = vmatpush3.bf16.msra.mxu0 %v672_v5 }
   0xf   : > { %s625_s13 = sshll.u32 %s896_s21, 4  ;;  %s615_s14 = sshll.u32 %s896_s21, 3  ;;  %677 = vmatprep.subr.bf16.mxu0 %v676_v8 }
  0x10   : > { %s300_s17 = scalar_lea.vmem %s884_s0, %s625_s13  ;;  %s308_s26 = scalar_lea.vmem %s885_s1, %s615_s14 }
  0x11   : > { %v319_v10 = vld [vmem:[%s300_s17] sm:$0xff]  ;;  %v320_v11 = vld [vmem:[%s300_s17 + $0x8] sm:$0xff]  ;;  %s317_s28 = scalar_lea.vmem %s890_s6, %s625_s13 }
  0x12   : > { %v326_v13 = vrot.slane %v319_v10, 1  ;;  %v327_v14 = vrot.slane %v320_v11, 1  ;;  %v338_v15 = vrot.slane %v319_v10, 2  ;;  %v339_v16 = vrot.slane %v320_v11, 2  ;;  %v321_v17 = vld [vmem:[%s308_s26] sm:$0x3]  ;;  %679 = vmatpush3.bf16.msra.mxu0 %v676_v8 }
  0x13   : > { %v329_v18 = vrot.slane %v321_v17, 1  ;;  %v341_v19 = vrot.slane %v321_v17, 2  ;;  %681 = vmatprep.subr.bf16.mxu0 %v680_v22 }
  0x14   : > { %v328_v20 = vsel %vm325_vm0, %v326_v13, %v327_v14  ;;  %v340_v21 = vsel %vm337_vm1, %v338_v15, %v339_v16 }
  0x15   : > { %331 = vrot.lane.b32.xlu0 %v328_v20, %s746_s29  ;;  %343 = vrot.lane.b32.xlu1 %v340_v21, %s747_s30  ;;  %v330_v25 = vsel %vm325_vm0, %v327_v14, %v329_v18  ;;  %v342_v26 = vsel %vm337_vm1, %v339_v16, %v341_v19 }
  0x16   : > { %683 = vmatpush3.bf16.msra.mxu0 %v680_v22 }
  0x17   : > { %685 = vmatprep.subr.bf16.mxu0 %v684_v27 }
  0x19   : > { %333 = vrot.lane.b32.xlu0 %v330_v25, %s746_s29  ;;  %345 = vrot.lane.b32.xlu1 %v342_v26, %s747_s30 }
  0x1a   : > { %687 = vmatpush3.bf16.msra.mxu0 %v684_v27 }
  0x1b   : > { %689 = vmatprep.subr.bf16.mxu0 %v688_v30 }
  0x1e   : > { %691 = vmatpush3.bf16.msra.mxu0 %v688_v30 }
  0x87   : > { %v332_v31 = vpop.permute.xlu0 %331  ;;  %v344_v32 = vpop.permute.xlu1 %343 }
  0x88   : > { %v350_v33 = vsel %vm349_vm2, %v319_v10, %v332_v31 }
  0x89   : > { %v353_v34 = vsel %vm352_vm3, %v350_v33, %v344_v32 }
  0x8a   : > { %665 = vmatprep.mubr.msk.f32.mxu0 %vm374_vm4, %v353_v34 }
  0x8b   : > { %v334_v35 = vpop.permute.xlu0 %333  ;;  %v346_v36 = vpop.permute.xlu1 %345 }
  0x8c   : > { %v351_v37 = vsel %vm349_vm2, %v320_v11, %v334_v35 }
  0x8d   : > { %v354_v38 = vsel %vm352_vm3, %v351_v37, %v346_v36 }
  0x8e   : > { %666 = vmatmul.mubr.msk.f32.vlgmr.msra.gmra.mrb[0].mxu0 %vm374_vm4, %v354_v38 }
 0x161   : > { %v667_v40 = vpop.f32.mrb[0].mxu0 }
 0x162   : > { %v453_v41 = vadd.f32 %v667_v40, %v618_v39  ;;  %v447_v42 = vpop.f32.mrb[1].mxu0 }
 0x163   : > { %v448_v43 = vadd.f32 %v618_v39, %v447_v42 }
 0x164   : > { %v459_v44 = vsel %vm349_vm2, %v453_v41, 0.0 }
 0x165   : > { %460 = vadd.xlane.f32.xlu1 %v459_v44  ;;  %v456_v45 = vsel %vm349_vm2, %v448_v43, 0.0 }
 0x166   : > { %457 = vadd.xlane.f32.xlu0 %v456_v45 }
 0x1f2   : > { %v461_v46 = vpop.xlane.xlu1 %460 }
 0x1f3   : > { %v463_v47 = vmul.f32 0.03125, %v461_v46  ;;  %v458_v48 = vpop.xlane.xlu0 %457 }
 0x1f4   : > { %v462_v49 = vmul.f32 0.03125, %v458_v48 }
 0x1f5   : > { %v465_v50 = vsub.f32 %v453_v41, %v463_v47 }
 0x1f6   : > { %v464_v51 = vsub.f32 %v448_v43, %v462_v49 }
 0x1f7   : > { %v467_v54 = vmul.f32 %v465_v50, %v465_v50 }
 0x1f8   : > { %v466_v52 = vmul.f32 %v464_v51, %v464_v51 }
 0x1f9   : > { %v471_v55 = vsel %vm349_vm2, %v467_v54, 0.0 }
 0x1fa   : > { %v468_v53 = vsel %vm349_vm2, %v466_v52, 0.0 }
 0x1fb   : > { %469 = vadd.xlane.f32.xlu0 %v468_v53 }
 0x1ff   : > { %472 = vadd.xlane.f32.xlu0 %v471_v55 }
 0x288   : > { %v470_v56 = vpop.xlane.xlu0 %469 }
 0x289   : > { %v474_v57 = vmul.f32 0.03125, %v470_v56 }
 0x28b   : > { %v476_v58 = vmax.f32 %v474_v57, 0.0 }
 0x28c   : > { %v473_v59 = vpop.xlane.xlu0 %472 }
 0x28d   : > { %v478_v60 = vadd.f32 1e-05, %v476_v58  ;;  %v475_v61 = vmul.f32 0.03125, %v473_v59 }
 0x28f   : > { %718 = vrsqrt.f32 %v478_v60  ;;  %v477_v62 = vmax.f32 %v475_v61, 0.0 }
 0x291   : > { %v479_v63 = vadd.f32 1e-05, %v477_v62 }
 0x293   : > { %720 = vrsqrt.f32 %v479_v63 }
 0x299   : > { %v719_v0 = vpop.eup %718 }
 0x29a   : > { %v482_v2 = vmul.f32 %v719_v0, %v464_v51 }
 0x29c   : > { %v491_v4 = vmul.f32 %v621_v1, %v482_v2 }
 0x29d   : > { %v721_v5 = vpop.eup %720 }
 0x29e   : > { %v500_v6 = vadd.f32 %v622_v3, %v491_v4  ;;  %v483_v7 = vmul.f32 %v721_v5, %v465_v50 }
 0x2a0   : > { %v502_v8 = vmax.f32 %v500_v6, 0.0  ;;  %v492_v9 = vmul.f32 %v621_v1, %v483_v7 }
 0x2a2   : > { %504 = vst.msk [vmem:[%s317_s28] sm:$0xff] %vm349_vm2, %v502_v8  ;;  %v501_v10 = vadd.f32 %v622_v3, %v492_v9 }
 0x2a4   : > { %v503_v11 = vmax.f32 %v501_v10, 0.0 }
 0x2a6   : > { %505 = vst.msk [vmem:[%s317_s28 + $0x8] sm:$0xff] %vm349_vm2, %v503_v11 }
 0x2a7 PF: > { %s16_s23 = sadd.s32 1, %s744_s23   ;;  %s891_s21 = smov %s740_s22 }
 0x2a8   : > { %p13_p5 = scmp.ge.s32.totalorder %s16_s23, 4   ;;  %s892_s22 = smov %s894_s24 }
 0x2aa   :  { %15 = sbr.rel (!%p13_p5) target bundleno = 2 (0x2), region = 77 }

// kernel: tpu_custom_call.1
= control target key start
LH: loop header
LB: loop body
LE: loop exit
PB: predicated region body
PF: predicated region fallthrough
CT: control target
= control target key end

     0   :  { %s783_s21 = smov 0   ;;  %s785_s22 = smov 0   ;;  %s884_s0 = inlined_call_operand.vmem [shape: f32[2,16,32], index: 0, kind: input, shape index: {}]   ;;  %s885_s1 = inlined_call_operand.vmem [shape: f32[2,1,8,32], index: 1, kind: input, shape index: {}]   ;;  %s886_s2 = inlined_call_operand.vmem [shape: f32[96,32], index: 2, kind: input, shape index: {}]   ;;  %s887_s3 = inlined_call_operand.vmem [shape: f32[1,32], index: 3, kind: input, shape index: {}]   ;;  %s888_s4 = inlined_call_operand.vmem [shape: f32[1,32], index: 4, kind: input, shape index: {}]   ;;  %s889_s5 = inlined_call_operand.vmem [shape: f32[1,32], index: 5, kind: input, shape index: {}]   ;;  %s890_s6 = inlined_call_operand.vmem [shape: f32[2,14,32], index: 6, kind: output, shape index: {}]  }
   0x1   :  { %s787_s23 = smov 0  }
   0x2 LB: > { %s28_s24 = sadd.s32 1, %s740_s22  ;;  %p612_p0 = scmp.ge.s32.totalorder %s744_s23, 1  ;;  %s744_s23 = sphi %s787_s23, %s16_s23   ;;  %s740_s22 = sphi %s785_s22, %s892_s22   ;;  %s736_s21 = sphi %s783_s21, %s891_s21  }
   0x3   : > { %p30_p1 = scmp.ge.s32.totalorder %s28_s24, 2  ;;  %p247_p2 = scmp.lt.s32.totalorder %s744_s23, 3 }
   0x5   : > { %s894_s24 = smov (%p30_p1, %s28_s24), 0  ;;  %p248_p3 = pnand %p612_p0, %p247_p2 }
   0x6   : > { %p293_p4 = scmp.lt.s32.totalorder (!%p248_p3), %s736_s21, 1  ;;  %v355_v0 = vld [vmem:[%s886_s2] sm:$0xff] (!%p248_p3)  ;;  %v356_v1 = vld [vmem:[%s886_s2 + $0x8] sm:$0xff] (!%p248_p3)  ;;  %v357_v3 = vld [vmem:[%s886_s2 + $0x10] sm:$0xff] (!%p248_p3)  ;;  %vm325_vm0 = vcmask (!%p248_p3), 1046528   ;;  %vm337_vm1 = vcmask (!%p248_p3), 1045504  }
   0x7   : > { %251 = sbr.rel (%p248_p3) target bundleno = 679 (0x2a7), region = 44  ;;  %v668_v2 = vpack.c.bf16 (!%p248_p3), %v356_v1, %v355_v0  ;;  %v358_v4 = vld [vmem:[%s886_s2 + $0x18] sm:$0xff] (!%p248_p3)  ;;  %v359_v6 = vld [vmem:[%s886_s2 + $0x20] sm:$0xff] (!%p248_p3)  ;;  %v360_v7 = vld [vmem:[%s886_s2 + $0x28] sm:$0xff] (!%p248_p3)  ;;  %s746_s29 = smov (!%p248_p3), 32   ;;  %vm349_vm2 = vcmask (!%p248_p3), 261120  }
   0x8   : > { %v672_v5 = vpack.c.bf16 (!%p248_p3), %v358_v4, %v357_v3  ;;  %v676_v8 = vpack.c.bf16 (!%p248_p3), %v360_v7, %v359_v6  ;;  %v361_v9 = vld [vmem:[%s886_s2 + $0x30] sm:$0xff] (!%p248_p3)  ;;  %v362_v12 = vld [vmem:[%s886_s2 + $0x38] sm:$0xff] (!%p248_p3)  ;;  %s747_s30 = smov (!%p248_p3), 64   ;;  %v363_v23 = vld [vmem:[%s886_s2 + $0x40] sm:$0xff] (!%p248_p3)  ;;  %vm352_vm3 = vcmask (!%p248_p3), 523264   ;;  %vm374_vm4 = vcmask (!%p248_p3), 785408  }
   0x9   : > { %669 = vmatprep.subr.bf16.mxu0 (!%p248_p3), %v668_v2  ;;  %v680_v22 = vpack.c.bf16 (!%p248_p3), %v362_v12, %v361_v9  ;;  %v364_v24 = vld [vmem:[%s886_s2 + $0x48] sm:$0xff] (!%p248_p3)  ;;  %v365_v28 = vld [vmem:[%s886_s2 + $0x50] sm:$0xff] (!%p248_p3)  ;;  %v366_v29 = vld [vmem:[%s886_s2 + $0x58] sm:$0xff] (!%p248_p3) }
   0xa   : > { %671 = vmatpush3.bf16.msra.mxu0 (!%p248_p3), %v668_v2  ;;  %v684_v27 = vpack.c.bf16 (!%p248_p3), %v364_v24, %v363_v23  ;;  %v688_v30 = vpack.c.bf16 (!%p248_p3), %v366_v29, %v365_v28  ;;  %v618_v39 = vld [vmem:[%s887_s3] ss:$0 sm:$0xff] (!%p248_p3) }
   0xb   : > { %673 = vmatprep.subr.bf16.mxu0 (!%p248_p3), %v672_v5  ;;  %v621_v1 = vld [vmem:[%s888_s4] ss:$0 sm:$0xff] (!%p248_p3) }
   0xc   : > { %v622_v3 = vld [vmem:[%s889_s5] ss:$0 sm:$0xff] (!%p248_p3) }
   0xe   : > { %s896_s21 = smov (!%p293_p4, %s736_s21), 1  ;;  %675 = vmatpush3.bf16.msra.mxu0 %v672_v5 }
   0xf   : > { %s625_s13 = sshll.u32 %s896_s21, 4  ;;  %s615_s14 = sshll.u32 %s896_s21, 3  ;;  %677 = vmatprep.subr.bf16.mxu0 %v676_v8 }
  0x10   : > { %s300_s17 = scalar_lea.vmem %s884_s0, %s625_s13  ;;  %s308_s26 = scalar_lea.vmem %s885_s1, %s615_s14 }
  0x11   : > { %v319_v10 = vld [vmem:[%s300_s17] sm:$0xff]  ;;  %v320_v11 = vld [vmem:[%s300_s17 + $0x8] sm:$0xff]  ;;  %s317_s28 = scalar_lea.vmem %s890_s6, %s625_s13 }
  0x12   : > { %v326_v13 = vrot.slane %v319_v10, 1  ;;  %v327_v14 = vrot.slane %v320_v11, 1  ;;  %v338_v15 = vrot.slane %v319_v10, 2  ;;  %v339_v16 = vrot.slane %v320_v11, 2  ;;  %v321_v17 = vld [vmem:[%s308_s26] sm:$0x3]  ;;  %679 = vmatpush3.bf16.msra.mxu0 %v676_v8 }
  0x13   : > { %v329_v18 = vrot.slane %v321_v17, 1  ;;  %v341_v19 = vrot.slane %v321_v17, 2  ;;  %681 = vmatprep.subr.bf16.mxu0 %v680_v22 }
  0x14   : > { %v328_v20 = vsel %vm325_vm0, %v326_v13, %v327_v14  ;;  %v340_v21 = vsel %vm337_vm1, %v338_v15, %v339_v16 }
  0x15   : > { %331 = vrot.lane.b32.xlu0 %v328_v20, %s746_s29  ;;  %343 = vrot.lane.b32.xlu1 %v340_v21, %s747_s30  ;;  %v330_v25 = vsel %vm325_vm0, %v327_v14, %v329_v18  ;;  %v342_v26 = vsel %vm337_vm1, %v339_v16, %v341_v19 }
  0x16   : > { %683 = vmatpush3.bf16.msra.mxu0 %v680_v22 }
  0x17   : > { %685 = vmatprep.subr.bf16.mxu0 %v684_v27 }
  0x19   : > { %333 = vrot.lane.b32.xlu0 %v330_v25, %s746_s29  ;;  %345 = vrot.lane.b32.xlu1 %v342_v26, %s747_s30 }
  0x1a   : > { %687 = vmatpush3.bf16.msra.mxu0 %v684_v27 }
  0x1b   : > { %689 = vmatprep.subr.bf16.mxu0 %v688_v30 }
  0x1e   : > { %691 = vmatpush3.bf16.msra.mxu0 %v688_v30 }
  0x87   : > { %v332_v31 = vpop.permute.xlu0 %331  ;;  %v344_v32 = vpop.permute.xlu1 %343 }
  0x88   : > { %v350_v33 = vsel %vm349_vm2, %v319_v10, %v332_v31 }
  0x89   : > { %v353_v34 = vsel %vm352_vm3, %v350_v33, %v344_v32 }
  0x8a   : > { %665 = vmatprep.mubr.msk.f32.mxu0 %vm374_vm4, %v353_v34 }
  0x8b   : > { %v334_v35 = vpop.permute.xlu0 %333  ;;  %v346_v36 = vpop.permute.xlu1 %345 }
  0x8c   : > { %v351_v37 = vsel %vm349_vm2, %v320_v11, %v334_v35 }
  0x8d   : > { %v354_v38 = vsel %vm352_vm3, %v351_v37, %v346_v36 }
  0x8e   : > { %666 = vmatmul.mubr.msk.f32.vlgmr.msra.gmra.mrb[0].mxu0 %vm374_vm4, %v354_v38 }
 0x161   : > { %v667_v40 = vpop.f32.mrb[0].mxu0 }
 0x162   : > { %v453_v41 = vadd.f32 %v667_v40, %v618_v39  ;;  %v447_v42 = vpop.f32.mrb[1].mxu0 }
 0x163   : > { %v448_v43 = vadd.f32 %v618_v39, %v447_v42 }
 0x164   : > { %v459_v44 = vsel %vm349_vm2, %v453_v41, 0.0 }
 0x165   : > { %460 = vadd.xlane.f32.xlu1 %v459_v44  ;;  %v456_v45 = vsel %vm349_vm2, %v448_v43, 0.0 }
 0x166   : > { %457 = vadd.xlane.f32.xlu0 %v456_v45 }
 0x1f2   : > { %v461_v46 = vpop.xlane.xlu1 %460 }
 0x1f3   : > { %v463_v47 = vmul.f32 0.03125, %v461_v46  ;;  %v458_v48 = vpop.xlane.xlu0 %457 }
 0x1f4   : > { %v462_v49 = vmul.f32 0.03125, %v458_v48 }
 0x1f5   : > { %v465_v50 = vsub.f32 %v453_v41, %v463_v47 }
 0x1f6   : > { %v464_v51 = vsub.f32 %v448_v43, %v462_v49 }
 0x1f7   : > { %v467_v54 = vmul.f32 %v465_v50, %v465_v50 }
 0x1f8   : > { %v466_v52 = vmul.f32 %v464_v51, %v464_v51 }
 0x1f9   : > { %v471_v55 = vsel %vm349_vm2, %v467_v54, 0.0 }
 0x1fa   : > { %v468_v53 = vsel %vm349_vm2, %v466_v52, 0.0 }
 0x1fb   : > { %469 = vadd.xlane.f32.xlu0 %v468_v53 }
 0x1ff   : > { %472 = vadd.xlane.f32.xlu0 %v471_v55 }
 0x288   : > { %v470_v56 = vpop.xlane.xlu0 %469 }
 0x289   : > { %v474_v57 = vmul.f32 0.03125, %v470_v56 }
 0x28b   : > { %v476_v58 = vmax.f32 %v474_v57, 0.0 }
 0x28c   : > { %v473_v59 = vpop.xlane.xlu0 %472 }
 0x28d   : > { %v478_v60 = vadd.f32 1e-05, %v476_v58  ;;  %v475_v61 = vmul.f32 0.03125, %v473_v59 }
 0x28f   : > { %718 = vrsqrt.f32 %v478_v60  ;;  %v477_v62 = vmax.f32 %v475_v61, 0.0 }
 0x291   : > { %v479_v63 = vadd.f32 1e-05, %v477_v62 }
 0x293   : > { %720 = vrsqrt.f32 %v479_v63 }
 0x299   : > { %v719_v0 = vpop.eup %718 }
 0x29a   : > { %v482_v2 = vmul.f32 %v719_v0, %v464_v51 }
 0x29c   : > { %v491_v4 = vmul.f32 %v621_v1, %v482_v2 }
 0x29d   : > { %v721_v5 = vpop.eup %720 }
 0x29e   : > { %v500_v6 = vadd.f32 %v622_v3, %v491_v4  ;;  %v483_v7 = vmul.f32 %v721_v5, %v465_v50 }
 0x2a0   : > { %v502_v8 = vmax.f32 %v500_v6, 0.0  ;;  %v492_v9 = vmul.f32 %v621_v1, %v483_v7 }
 0x2a2   : > { %504 = vst.msk [vmem:[%s317_s28] sm:$0xff] %vm349_vm2, %v502_v8  ;;  %v501_v10 = vadd.f32 %v622_v3, %v492_v9 }
 0x2a4   : > { %v503_v11 = vmax.f32 %v501_v10, 0.0 }
 0x2a6   : > { %505 = vst.msk [vmem:[%s317_s28 + $0x8] sm:$0xff] %vm349_vm2, %v503_v11 }
 0x2a7 PF: > { %s16_s23 = sadd.s32 1, %s744_s23   ;;  %s891_s21 = smov %s740_s22 }
 0x2a8   : > { %p13_p5 = scmp.ge.s32.totalorder %s16_s23, 4   ;;  %s892_s22 = smov %s894_s24 }
 0x2aa   :  { %15 = sbr.rel (!%p13_p5) target bundleno = 2 (0x2), region = 77 }

</bundles_post_ra>
